<compile_context>
chip_gen: v6e
topology: v6e:2x2x1
jax: 0.10.0
libtpu: 0.0.40
codegen_flags: <defaults>
</compile_context>

<pallas_src>
import functools
import math

import jax
import jax.numpy as jnp
from jax.experimental import pallas as pl
from jax.experimental.pallas import tpu as pltpu


# ----------------------------------------------------------------------------
# Small helpers
# ----------------------------------------------------------------------------
def _round_up(x, m):
    return ((x + m - 1) // m) * m


def _pick_tile(dim, max_tile, unit=128):
    """Largest multiple of `unit` <= max_tile that divides round_up(dim, unit)."""
    dp = _round_up(dim, unit)
    if dp <= max_tile:
        return dp
    for cand in range(max_tile, unit - 1, -unit):
        if dp % cand == 0:
            return cand
    return unit


def _pad_to(x, mults):
    pads, needs = [], False
    for dim, m in zip(x.shape, mults):
        p = (-dim) % m
        pads.append((0, p))
        needs = needs or p > 0
    return jnp.pad(x, pads) if needs else x


def _physical_vmem_bytes():
    try:
        return int(pltpu.get_tpu_info().vmem_capacity_bytes)
    except Exception:
        return 64 * 1024 * 1024          # conservative fallback (v7x size)


def _vmem_limit_bytes(tm, tk, tn, w_bytes, out_bytes, dequant):
    """Size the scoped-VMEM request from actual tile usage, generation-aware cap."""
    x_tile = tm * tk * 2                 # bf16 activations (double-buffered)
    w_tile = tk * tn * w_bytes
    o_tile = tm * tn * out_bytes
    vec = tn * 4                         # scale / bias rows
    acc = tm * tn * 4
    need = 2 * (x_tile + w_tile + o_tile + 2 * vec) + acc
    if dequant:
        need += tk * tn * (2 + 4)        # in-kernel bf16 dequant copy + slack
    cap = (5 * _physical_vmem_bytes()) // 8
    return int(min(cap, max(24 * 1024 * 1024, need + 8 * 1024 * 1024)))


# ----------------------------------------------------------------------------
# Pallas kernel 1: tiled matmul + per-column scale + bias + optional ReLU.
# Activations bf16; weights bf16 or int8 (dequantized to bf16 in-kernel);
# fp32 VMEM accumulator; fp32 epilogue.
# ----------------------------------------------------------------------------
def _matmul_bias_act_kernel(x_ref, w_ref, s_ref, b_ref, o_ref, acc_ref,
                            *, relu, dequant):
    @pl.when(pl.program_id(2) == 0)
    def _():
        acc_ref[...] = jnp.zeros_like(acc_ref)

    w = w_ref[...]
    if dequant:                          # int8 -> bf16 (values exact in bf16)
        w = w.astype(jnp.bfloat16)
    acc_ref[...] += jnp.dot(x_ref[...], w, preferred_element_type=jnp.float32)

    @pl.when(pl.program_id(2) == pl.num_programs(2) - 1)
    def _():
        r = acc_ref[...] * s_ref[...] + b_ref[...]     # scale, bias are fp32
        if relu:
            r = jnp.maximum(r, 0.0)
        o_ref[...] = r.astype(o_ref.dtype)


def prep_linear(w, b, *, quantize, tn_max=2048, tk_max=2048):
    """Hoisted (one-time) weight prep: optional int8 quant, cast, pad to tiles."""
    K, N = w.shape
    tk = _pick_tile(K, tk_max)
    tn = _pick_tile(N, tn_max)
    w32 = w.astype(jnp.float32)
    if quantize:
        amax = jnp.max(jnp.abs(w32), axis=0, keepdims=True)        # (1, N)
        scale = jnp.maximum(amax, 1e-8) / 127.0
        w_store = jnp.clip(jnp.round(w32 / scale), -127.0, 127.0).astype(jnp.int8)
    else:
        scale = jnp.ones((1, N), jnp.float32)
        w_store = w32.astype(jnp.bfloat16)
    return dict(
        w=_pad_to(w_store, (tk, tn)),
        scale=_pad_to(scale, (1, tn)),
        b=_pad_to(b.astype(jnp.float32).reshape(1, N), (1, tn)),
        K=K, N=N, tk=tk, tn=tn, quantized=quantize)


def linear_fwd(x, lp, *, relu, out_dtype, tm_max=128):
    """(M,K) @ prepared-weight + bias, optional ReLU, tiled Pallas TPU kernel."""
    M, K = x.shape
    assert K == lp["K"], (K, lp["K"])
    tk, tn = lp["tk"], lp["tn"]
    tm = min(tm_max, _round_up(M, 16))     # 16: native bf16 sublane tile

    xp = _pad_to(x.astype(jnp.bfloat16), (tm, tk))
    Mp, Kp = xp.shape
    Np = lp["w"].shape[1]
    assert Kp == lp["w"].shape[0], (Kp, lp["w"].shape)
    grid = (Mp // tm, Np // tn, Kp // tk)

    w_bytes = jnp.dtype(lp["w"].dtype).itemsize
    out_bytes = jnp.dtype(out_dtype).itemsize
    kern = functools.partial(_matmul_bias_act_kernel, relu=relu,
                             dequant=lp["quantized"])
    out = pl.pallas_call(
        kern,
        out_shape=jax.ShapeDtypeStruct((Mp, Np), out_dtype),
        grid=grid,
        in_specs=[
            pl.BlockSpec((tm, tk), lambda i, j, k: (i, k)),
            pl.BlockSpec((tk, tn), lambda i, j, k: (k, j)),
            pl.BlockSpec((1, tn), lambda i, j, k: (0, j)),
            pl.BlockSpec((1, tn), lambda i, j, k: (0, j)),
        ],
        out_specs=pl.BlockSpec((tm, tn), lambda i, j, k: (i, j)),
        scratch_shapes=[pltpu.VMEM((tm, tn), jnp.float32)],
        compiler_params=pltpu.CompilerParams(
            dimension_semantics=("parallel", "parallel", "arbitrary"),
            vmem_limit_bytes=_vmem_limit_bytes(tm, tk, tn, w_bytes, out_bytes,
                                               lp["quantized"])),
    )(xp, lp["w"], lp["scale"], lp["b"])
    return out[:M, :lp["N"]]


# ----------------------------------------------------------------------------
# Pallas kernel 2: AdaptiveAvgPool2d((7,7)) — exact PyTorch window arithmetic
# (start = floor(i*H/OH), end = ceil((i+1)*H/OH)), separable W-then-H pooling,
# one grid step over the whole batch, single full-block store.
# ----------------------------------------------------------------------------
def _adaptive_avg_pool_kernel(x_ref, o_ref, *, H, W, OH, OW):
    x = x_ref[...].astype(jnp.float32)                 # (N, H, W, C)
    w_uniform = (W % OW == 0)
    h_uniform = (H % OH == 0)

    cols = []
    for oj in range(OW):
        w0 = (oj * W) // OW
        w1 = -((-(oj + 1) * W) // OW)                  # ceil((oj+1)*W/OW)
        s = jnp.sum(x[:, :, w0:w1, :], axis=2, keepdims=True)
        cols.append(s if w_uniform else s * (1.0 / (w1 - w0)))
    xw = jnp.concatenate(cols, axis=2)                 # (N, H, OW, C)

    rows = []
    for oi in range(OH):
        h0 = (oi * H) // OH
        h1 = -((-(oi + 1) * H) // OH)                  # ceil((oi+1)*H/OH)
        s = jnp.sum(xw[:, h0:h1, :, :], axis=1, keepdims=True)
        rows.append(s if h_uniform else s * (1.0 / (h1 - h0)))
    out = jnp.concatenate(rows, axis=1)                # (N, OH, OW, C)

    inv = 1.0                                          # hoisted uniform-window scale
    if w_uniform:
        inv /= (W // OW)
    if h_uniform:
        inv /= (H // OH)
    if inv != 1.0:
        out = out * inv
    o_ref[...] = out.astype(o_ref.dtype)


def adaptive_avg_pool(x, out_hw=(7, 7)):
    N, H, W, C = x.shape
    OH, OW = out_hw
    kern = functools.partial(_adaptive_avg_pool_kernel, H=H, W=W, OH=OH, OW=OW)
    # Whole batch in one grid step — the full input is only a few hundred KB.
    return pl.pallas_call(
        kern,
        out_shape=jax.ShapeDtypeStruct((N, OH, OW, C), x.dtype),
        grid=(1,),
        in_specs=[pl.BlockSpec((N, H, W, C), lambda i: (0, 0, 0, 0))],
        out_specs=pl.BlockSpec((N, OH, OW, C), lambda i: (0, 0, 0, 0)),
    )(x)


# ----------------------------------------------------------------------------
# Glue: 3x3 conv (stride 1, pad 1) via im2col (bf16) + Pallas GEMM epilogue.
# ----------------------------------------------------------------------------
def conv3x3_relu(x_nhwc, lp):
    # x: (N,H,W,Cin); lp: prepared linear params for the (9*Cin, Cout) GEMM.
    N, H, W, Cin = x_nhwc.shape
    xp = jnp.pad(x_nhwc.astype(jnp.bfloat16), ((0, 0), (1, 1), (1, 1), (0, 0)))
    # TODO(synk): at real VGG sizes (224x224), build the 3x3 patches inside the
    # matmul kernel (shifted-window k axis) instead of materializing im2col.
    cols = [xp[:, dy:dy + H, dx:dx + W, :] for dy in range(3) for dx in range(3)]
    patches = jnp.concatenate(cols, axis=-1).reshape(N * H * W, 9 * Cin)
    out = linear_fwd(patches, lp, relu=True, out_dtype=jnp.bfloat16, tm_max=256)
    return out.reshape(N, H, W, lp["N"])


def max_pool_2x2(x):
    # Part of the injected `features` submodule; tiny 2x2 window max kept as glue.
    # TODO(synk): fuse into the conv epilogue for real VGG feature-map sizes.
    N, H, W, C = x.shape
    return x.reshape(N, H // 2, 2, W // 2, 2, C).max(axis=(2, 4))


# ----------------------------------------------------------------------------
# Deterministic parameter init (mirrors VGG._initialize_weights).
# `features` is an injected submodule in the torch code; here a small synthetic
# VGG-style stack ending in 512 channels is used: conv3->64, maxpool, conv64->512.
# All weight preprocessing (reshape / quantize / cast / pad) happens here, once.
# ----------------------------------------------------------------------------
def init_params(key, num_classes=10):
    ks = jax.random.split(key, 5)

    def kaiming_fan_out(k, shape):            # shape = (3, 3, Cin, Cout)
        fan_out = shape[0] * shape[1] * shape[3]
        return jax.random.normal(k, shape, jnp.float32) * math.sqrt(2.0 / fan_out)

    def linear_w(k, shape):
        return jax.random.normal(k, shape, jnp.float32) * 0.01

    conv1_w = kaiming_fan_out(ks[0], (3, 3, 3, 64))
    conv2_w = kaiming_fan_out(ks[1], (3, 3, 64, 512))
    fc1_w = linear_w(ks[2], (512 * 7 * 7, 4096))
    fc2_w = linear_w(ks[3], (4096, 4096))
    fc3_w = linear_w(ks[4], (4096, num_classes))

    # torch.flatten(x, 1) of the NCHW pooled map indexes rows as c*49 + h*7 + w.
    # We keep features in NHWC and flatten as h*7*512 + w*512 + c, so permute
    # fc1's rows once here (removes the NHWC->NCHW transpose in the forward).
    h = jnp.arange(7).reshape(7, 1, 1)
    w = jnp.arange(7).reshape(1, 7, 1)
    c = jnp.arange(512).reshape(1, 1, 512)
    perm = (c * 49 + h * 7 + w).reshape(-1)            # (25088,)
    fc1_w = fc1_w[perm, :]

    return {
        "conv1": prep_linear(conv1_w.reshape(9 * 3, 64),
                             jnp.zeros((64,), jnp.float32), quantize=False),
        "conv2": prep_linear(conv2_w.reshape(9 * 64, 512),
                             jnp.zeros((512,), jnp.float32), quantize=False),
        "fc1": prep_linear(fc1_w, jnp.zeros((4096,), jnp.float32), quantize=True),
        "fc2": prep_linear(fc2_w, jnp.zeros((4096,), jnp.float32), quantize=True),
        "fc3": prep_linear(fc3_w, jnp.zeros((num_classes,), jnp.float32),
                           quantize=False),
    }


def vgg_forward(params, x_nchw):
    # NCHW (PyTorch) -> NHWC (kernel layout), bf16 activations.
    x = jnp.transpose(x_nchw, (0, 2, 3, 1)).astype(jnp.bfloat16)

    # self.features(x)  (synthetic small VGG-style feature stack, 512 ch out)
    x = conv3x3_relu(x, params["conv1"])
    x = max_pool_2x2(x)
    x = conv3x3_relu(x, params["conv2"])

    # self.avgpool = nn.AdaptiveAvgPool2d((7, 7))
    x = adaptive_avg_pool(x, (7, 7))
    # (original forward has a host-side debug print of x.size() here; omitted)

    # torch.flatten(x, 1): fc1 rows were permuted at init to NHWC flat order,
    # so the pooled NHWC map is flattened directly (no transpose needed).
    x = x.reshape(x.shape[0], -1)

    # classifier: Linear -> ReLU -> Dropout -> Linear -> ReLU -> Dropout -> Linear
    # nn.Dropout is identity at inference time.
    x = linear_fwd(x, params["fc1"], relu=True, out_dtype=jnp.bfloat16)
    x = linear_fwd(x, params["fc2"], relu=True, out_dtype=jnp.bfloat16)
    x = linear_fwd(x, params["fc3"], relu=False, out_dtype=jnp.float32)
    return x


if __name__ == "__main__":
    key = jax.random.PRNGKey(0)
    pkey, xkey = jax.random.split(key)
    num_classes = 10
    params = init_params(pkey, num_classes=num_classes)

    # Small input consistent with the module: batch=2, 3 channels, 28x28.
    x = jax.random.normal(xkey, (2, 3, 28, 28), jnp.float32)

    out = vgg_forward(params, x)
    out = jax.block_until_ready(out)

    assert out.shape == (2, num_classes), out.shape
    assert bool(jnp.all(jnp.isfinite(out)))
    print("KERNEL_OK")
</pallas_src>

<mosaic_0001>
module attributes {stable_mosaic.version = 11 : i64} {
  func.func @_matmul_bias_act_kernel(%arg0: i32, %arg1: i32, %arg2: i32, %arg3: memref<256x128xbf16, #tpu.memory_space<vmem>>, %arg4: memref<128x128xbf16, #tpu.memory_space<vmem>>, %arg5: memref<1x128xf32, #tpu.memory_space<vmem>>, %arg6: memref<1x128xf32, #tpu.memory_space<vmem>>, %arg7: memref<256x128xbf16, #tpu.memory_space<vmem>>, %arg8: memref<256x128xf32, #tpu.memory_space<vmem>>) attributes {dimension_semantics = [#tpu.dimension_semantics<parallel>, #tpu.dimension_semantics<parallel>, #tpu.dimension_semantics<arbitrary>], iteration_bounds = array<i64: 7, 1, 1>, scalar_prefetch = 0 : i64, scratch_operands = 1 : i64, tpu.core_type = #tpu.core_type<tc>, window_params = [{transform_indices = @transform_0, window_bounds = array<i64: 256, 128>}, {transform_indices = @transform_1, window_bounds = array<i64: 128, 128>}, {transform_indices = @transform_2, window_bounds = array<i64: 1, 128>}, {transform_indices = @transform_3, window_bounds = array<i64: 1, 128>}, {transform_indices = @transform_4, window_bounds = array<i64: 256, 128>}]} {
    %c0_i32 = arith.constant 0 : i32
    %0 = arith.cmpi eq, %arg2, %c0_i32 : i32
    %1 = arith.extui %0 : i1 to i32
    %c0_i32_0 = arith.constant 0 : i32
    %2 = arith.cmpi ne, %1, %c0_i32_0 : i32
    scf.if %2 {
      %cst_10 = arith.constant 0.000000e+00 : f32
      %12 = vector.broadcast %cst_10 : f32 to vector<256x128xf32>
      %c0_11 = arith.constant 0 : index
      %c0_12 = arith.constant 0 : index
      %13 = vector.load %arg8[%c0_11, %c0_12] : memref<256x128xf32, #tpu.memory_space<vmem>>, vector<256x128xf32>
      tpu.vector_store %arg8[%c0_11, %c0_12], %12 {strides = array<i32>} : memref<256x128xf32, #tpu.memory_space<vmem>>, vector<256x128xf32>,
    } else {
    }
    %c0 = arith.constant 0 : index
    %c0_1 = arith.constant 0 : index
    %3 = vector.load %arg4[%c0, %c0_1] : memref<128x128xbf16, #tpu.memory_space<vmem>>, vector<128x128xbf16>
    %c0_2 = arith.constant 0 : index
    %c0_3 = arith.constant 0 : index
    %4 = vector.load %arg8[%c0_2, %c0_3] : memref<256x128xf32, #tpu.memory_space<vmem>>, vector<256x128xf32>
    %c0_4 = arith.constant 0 : index
    %c0_5 = arith.constant 0 : index
    %5 = vector.load %arg3[%c0_4, %c0_5] : memref<256x128xbf16, #tpu.memory_space<vmem>>, vector<256x128xbf16>
    %cst = arith.constant dense<0.000000e+00> : vector<256x128xf32>
    %6 = tpu.matmul %5, %3, %cst {dimension_numbers = #tpu.dot_dimension_numbers<[1], [0], [0], [1], [0, 0, 1, 1], [], []>} : vector<256x128xbf16>, vector<128x128xbf16>, vector<256x128xf32> -> vector<256x128xf32>
    %7 = arith.addf %4, %6 : vector<256x128xf32>
    %c0_6 = arith.constant 0 : index
    %c0_7 = arith.constant 0 : index
    %8 = vector.load %arg8[%c0_6, %c0_7] : memref<256x128xf32, #tpu.memory_space<vmem>>, vector<256x128xf32>
    tpu.vector_store %arg8[%c0_6, %c0_7], %7 {strides = array<i32>} : memref<256x128xf32, #tpu.memory_space<vmem>>, vector<256x128xf32>,
    %c0_i32_8 = arith.constant 0 : i32
    %9 = arith.cmpi eq, %arg2, %c0_i32_8 : i32
    %10 = arith.extui %9 : i1 to i32
    %c0_i32_9 = arith.constant 0 : i32
    %11 = arith.cmpi ne, %10, %c0_i32_9 : i32
    scf.if %11 {
      %c0_10 = arith.constant 0 : index
      %c0_11 = arith.constant 0 : index
      %12 = vector.load %arg8[%c0_10, %c0_11] : memref<256x128xf32, #tpu.memory_space<vmem>>, vector<256x128xf32>
      %c0_12 = arith.constant 0 : index
      %c0_13 = arith.constant 0 : index
      %13 = vector.load %arg5[%c0_12, %c0_13] : memref<1x128xf32, #tpu.memory_space<vmem>>, vector<1x128xf32>
      %14 = vector.broadcast %13 : vector<1x128xf32> to vector<256x128xf32>
      %15 = arith.mulf %12, %14 : vector<256x128xf32>
      %c0_14 = arith.constant 0 : index
      %c0_15 = arith.constant 0 : index
      %16 = vector.load %arg6[%c0_14, %c0_15] : memref<1x128xf32, #tpu.memory_space<vmem>>, vector<1x128xf32>
      %17 = vector.broadcast %16 : vector<1x128xf32> to vector<256x128xf32>
      %18 = arith.addf %15, %17 : vector<256x128xf32>
      %cst_16 = arith.constant 0.000000e+00 : f32
      %19 = vector.broadcast %cst_16 : f32 to vector<256x128xf32>
      %20 = arith.maximumf %18, %19 : vector<256x128xf32>
      %21 = arith.truncf %20 : vector<256x128xf32> to vector<256x128xbf16>
      %c0_17 = arith.constant 0 : index
      %c0_18 = arith.constant 0 : index
      %22 = vector.load %arg7[%c0_17, %c0_18] : memref<256x128xbf16, #tpu.memory_space<vmem>>, vector<256x128xbf16>
      tpu.vector_store %arg7[%c0_17, %c0_18], %21 {strides = array<i32>} : memref<256x128xbf16, #tpu.memory_space<vmem>>, vector<256x128xbf16>,
    } else {
    }
    return
  }
  func.func @transform_0(%arg0: i32, %arg1: i32, %arg2: i32) -> (i32, i32) {
    %c0_i32 = arith.constant 0 : i32
    return %arg0, %arg2 : i32, i32
  }
  func.func @transform_1(%arg0: i32, %arg1: i32, %arg2: i32) -> (i32, i32) {
    %c0_i32 = arith.constant 0 : i32
    return %arg2, %arg1 : i32, i32
  }
  func.func @transform_2(%arg0: i32, %arg1: i32, %arg2: i32) -> (i32, i32) {
    %c0_i32 = arith.constant 0 : i32
    %c0_i32_0 = arith.constant 0 : i32
    return %c0_i32, %arg1 : i32, i32
  }
  func.func @transform_3(%arg0: i32, %arg1: i32, %arg2: i32) -> (i32, i32) {
    %c0_i32 = arith.constant 0 : i32
    %c0_i32_0 = arith.constant 0 : i32
    return %c0_i32, %arg1 : i32, i32
  }
  func.func @transform_4(%arg0: i32, %arg1: i32, %arg2: i32) -> (i32, i32) {
    %c0_i32 = arith.constant 0 : i32
    return %arg0, %arg1 : i32, i32
  }
}

</mosaic_0001>

<bundles_post_ra>
// kernel: tpu_custom_call.1
= control target key start
LH: loop header
LB: loop body
LE: loop exit
PB: predicated region body
PF: predicated region fallthrough
CT: control target
= control target key end

     0   :  { %s2096_s0 = inlined_call_operand.hbm [shape: bf16[1792,128], index: 0, kind: input, shape index: {}]   ;;  %s2097_s1 = inlined_call_operand.hbm [shape: bf16[128,128], index: 1, kind: input, shape index: {}]   ;;  %s2098_s2 = inlined_call_operand.vmem [shape: f32[1,128], index: 2, kind: input, shape index: {}]   ;;  %s2099_s3 = inlined_call_operand.vmem [shape: f32[1,128], index: 3, kind: input, shape index: {}]   ;;  %s2100_s4 = inlined_call_operand.hbm [shape: bf16[1792,128], index: 4, kind: output, shape index: {}]  }
   0x1   :  { %2104 = sst [smem:[#allocation12_spill]] %s2097_s1 }
   0x2   :  { %9 = vsyncpa [#allocation4], 0 }
   0x3   :  { %11 = vsyncpa [#allocation4 + $0x1], 0 }
   0x4   :  { %12 = vsyncpa [#allocation7], 0 }
   0x5   :  { %13 = vsyncpa [#allocation5], 0 }
   0x6   :  { %15 = vsyncpa [#allocation5 + $0x1], 0  ;;  %s1796_s15 = smov 0   ;;  %s1798_s16 = smov 0  }
   0x7   :  { %s1800_s17 = smov 0   ;;  %s1802_s18 = smov 0  }
   0x8   :  { %s1804_s19 = smov 0   ;;  %s1806_s20 = smov 0  }
   0x9 LB: > { %s1229_s21 = sadd.s32 4294967295, %s1762_s20   ;;  %s1230_s22 = sadd.s32 4294967294, %s1762_s20   ;;  %s1762_s20 = sphi %s1806_s20, %s21_s20   ;;  %s1758_s19 = sphi %s1804_s19, %s2123_s19   ;;  %s1754_s18 = sphi %s1802_s18, %s2122_s18   ;;  %s1750_s17 = sphi %s1800_s17, %s2121_s17   ;;  %s1746_s16 = sphi %s1798_s16, %s2120_s16   ;;  %s1742_s15 = sphi %s1796_s15, %s2119_s15  }
   0xa   : > { %p62_p0 = scmp.ne.s32.totalorder %s1746_s16, %s1742_s15  ;;  %p1830_p1 = scmp.eq.s32.totalorder %s1229_s21, 0 }
   0xb   : > { %p1834_p2 = scmp.eq.s32.totalorder %s1229_s21, 6  ;;  %p174_p3 = scmp.eq.s32.totalorder %s1230_s22, 6 }
   0xc   : > { %p1840_p4 = por %p1830_p1, %p62_p0  ;;  %p1231_p5 = scmp.ge.s32.totalorder %s1762_s20, 1 }
   0xd   : > { %p1845_p6 = por %p174_p3, %p62_p0  ;;  %p181_p7 = scmp.lt.s32.totalorder %s1762_s20, 8 }
   0xe   : > { %s1764_s28 = smov [#allocation6]   ;;  %s40_s5 = sadd.s32 1, %s1758_s19 }
   0xf   : > { %s2108_s26 = scalar_select %p1845_p6, 1, 0 }
  0x10   : > { %p1850_p8 = pnand %p1231_p5, %p181_p7  ;;  %s197_s29 = sshll.u32 %s1764_s28, 4  ;;  %s198_s29 = int_to_ptr.vmem [resolvable:$true] %s197_s29 }
  0x11   : > { %s1635_s6 = scalar_lea.vmem %s198_s29, 1024  ;;  %p1643_p3 = scmp.lt.s32.totalorder %s198_s29, %s198_s29 }
  0x12   : > { %p1531_p9 = pneg %p1850_p8  ;;  %p1636_p12 = scmp.ne.s32.totalorder %s198_s29, %s1635_s6 }
  0x13   : > { %p1644_p5 = scmp.lt.s32.totalorder %s1635_s6, %s1635_s6 }
  0x14   : > { %p1858_p10 = pnand %p1531_p9, %p1830_p1 }
  0x15   : > { %p1645_p7 = por %p1644_p5, %p1643_p3 }
  0x16   : > { %p1626_p11 = pneg %p1858_p10 }
  0x18   : > { %p1638_p13 = pnand %p1636_p12, %p1626_p11 }
  0x1a   : > { %p1639_p0 = pneg %p1638_p13 }
  0x1c   : > { %p1646_p6 = pnand %p1645_p7, %p1639_p0 }
  0x1e   : > { %1649 = shalt.err (!%p1646_p6)
}
  0x1f   : > { %s2101_s7 = smov 64   ;;  %s2102_s8 = smov 4  }
  0x20   : > { %s2111_s1 = sld [smem:[#allocation12_spill]]  ;;  %p42_p6 = scmp.ge.s32.totalorder %s40_s5, 7 }
  0x21   : > { %s49_s11 = sadd.s32 1, %s1750_s17  ;;  %p56_p9 = scmp.ne.s32.totalorder %s1750_s17, %s1746_s16 }
  0x22   : > { %p57_p11 = scmp.eq.s32.totalorder %s1762_s20, 0  ;;  %s2125_s5 = smov (%p42_p6, %s40_s5), 0 }
  0x23   : > { %p1885_p13 = por %p1834_p2, %p56_p9  ;;  %s44_s14 = ssub.s32 %s1758_s19, %s2125_s5 }
  0x24   : > { %p1879_p12 = por %p57_p11, %p56_p9  ;;  %p1544_p0 = scmp.lt.s32.totalorder %s1762_s20, 7 }
  0x25   : > { %s2113_s13 = scalar_select %p1885_p13, 1, 0 }
  0x26   : > { %1534 = dma.hbm_to_vmem [thread:$0]  (!%p1858_p10), %s2111_s1, 1024, %s198_s29, [#allocation7], %s2101_s7, %s2101_s7, %s2102_s8  }
  0x27   : > { %p47_p10 = scmp.eq.s32.totalorder %s44_s14, 0  ;;  %s223_s21 = sand.u32 1, %s1750_s17  }
  0x28   : > { %s1236_s22 = sshll.u32 %s223_s21, 7  ;;  %s1306_s29 = sshll.u32 %s1758_s19, 11 }
  0x29   : > { %s1894_s28 = scalar_select %p47_p10, %s1750_s17, %s49_s11  }
  0x2a   : > { %s234_s9 = scalar_lea.hbm %s2096_s0, %s1306_s29  ;;  %s227_s10 = scalar_lea.vmem [#allocation3], %s1236_s22 }
  0x2b   : > { %s235_s7 = sshll.u32 %s227_s10, 4  ;;  %p1902_p2 = pnand %p1544_p0, %p1879_p12  ;;  %s236_s7 = int_to_ptr.vmem [resolvable:$true] %s235_s7 }
  0x2c   : > { %s224_s8 = scalar_lea.sflag [#allocation4], %s223_s21  ;;  %s1663_s14 = scalar_lea.vmem %s236_s7, 2048 }
  0x2d   : > { %p1652_p3 = pneg %p1902_p2  ;;  %p1664_p5 = scmp.ne.s32.totalorder %s236_s7, %s1663_s14 }
  0x2e   : > { %s1767_s11 = smov [#allocation3]  }
  0x2f   : > { %p1666_p7 = pnand %p1664_p5, %p1652_p3  ;;  %s1668_s1 = sshll.u32 %s1767_s11, 4  ;;  %s1669_s1 = int_to_ptr.vmem [resolvable:$false] %s1668_s1 }
  0x30   : > { %s1670_s29 = scalar_lea.vmem %s1669_s1, 4096  ;;  %p1671_p9 = scmp.lt.s32.totalorder %s236_s7, %s1669_s1 }
  0x31   : > { %p1667_p6 = pneg %p1666_p7  ;;  %p1672_p11 = scmp.lt.s32.totalorder %s1670_s29, %s1663_s14 }
  0x33   : > { %p1673_p10 = por %p1672_p11, %p1671_p9 }
  0x35   : > { %p1674_p13 = pnand %p1673_p10, %p1667_p6 }
  0x37   : > { %1677 = shalt.err (!%p1674_p13)
}
  0x38   : > { %s2115_s12 = smov 4   ;;  %s2116_s22 = smov 64  }
  0x39   : > { %1538 = dma.hbm_to_vmem [thread:$0]  (!%p1902_p2), %s234_s9, 2048, %s236_s7, %s224_s8, %s2116_s22, %s2116_s22, %s2115_s12  }
  0x3a   : > { %247 = sbr.rel (%p1850_p8) target bundleno = 344 (0x158), region = 36  ;;  %s1916_s21 = sand.u32 (!%p1850_p8), 1, %s1746_s16  }
  0x3b   : > { %s1240_s1 = sshll.u32 (!%p1850_p8), %s1916_s21, 7  ;;  %s250_s30 = scalar_lea.sflag (!%p1850_p8), [#allocation4], %s1916_s21 }
  0x3c   : > { %s1922_s6 = scalar_lea.vmem (!%p1850_p8), [#allocation3], %s1240_s1 }
  0x3f   : > { %1729 = dma.done.wait (%p1840_p4), %s250_s30, 2048  }
  0x40   : > { %1731 = vsyncadd (%p1840_p4), %s250_s30, 4294965248 }
  0x41   : > { %1733 = dma.done.wait (%p1830_p1), [#allocation7], 1024  }
  0x42   : > { %1735 = vsyncadd (%p1830_p1), [#allocation7], 4294966272  ;;  %v1600_v0 = vld [vmem:[#allocation6 + $0x38] sm:$0xff]   ;;  %v1601_v1 = vld [vmem:[#allocation6 + $0x30] sm:$0xff]   ;;  %s1980_s8 = scalar_lea.vmem [#allocation8], %s1240_s1  ;;  %s1339_s9 = sshll.u32 %s1754_s18, 11 }
  0x43   : > { %1459 = vmatprep.subr.bf16.mxu0 %v1600_v0  ;;  %1507 = vmatprep.subr.bf16.mxu1 %v1600_v0  ;;  %v1602_v2 = vld [vmem:[#allocation6 + $0x28] sm:$0xff]   ;;  %v1603_v3 = vld [vmem:[#allocation6 + $0x20] sm:$0xff]   ;;  %v1604_v6 = vld [vmem:[#allocation6 + $0x18] sm:$0xff]   ;;  %s1103_s10 = sshll.u32 %s1980_s8, 4  ;;  %s2043_s18 = scalar_lea.hbm %s2100_s4, %s1339_s9  ;;  %s2045_s10 = int_to_ptr.vmem [resolvable:$true] %s1103_s10 }
  0x44   : > { %1460 = vmatpush3.bf16.msra.mxu0 %v1600_v0  ;;  %1515 = vmatpush3.bf16.msra.mxu1 %v1600_v0  ;;  %v1608_v4 = vld [vmem:[%s1922_s6] sm:$0xff]   ;;  %v1605_v7 = vld [vmem:[#allocation6 + $0x10] sm:$0xff]   ;;  %v1606_v8 = vld [vmem:[#allocation6 + $0x8] sm:$0xff]   ;;  %s1089_s11 = scalar_lea.sflag [#allocation5], %s1916_s21  ;;  %s1678_s29 = scalar_lea.vmem %s2045_s10, 2048 }
  0x45   : > { %1461 = vmatprep.subr.bf16.mxu0 %v1601_v1  ;;  %1508 = vmatprep.subr.bf16.mxu1 %v1601_v1  ;;  %v1609_v5 = vld [vmem:[%s1922_s6 + $0x40] sm:$0xff]   ;;  %v1610_v10 = vld [vmem:[%s1922_s6 + $0x8] sm:$0xff]   ;;  %v1612_v12 = vld [vmem:[%s1922_s6 + $0x10] sm:$0xff]   ;;  %p1679_p1 = scmp.ne.s32.totalorder %s2045_s10, %s1678_s29  ;;  %p2117_p4 = scmp.ne.s32.totalorder %s2113_s13, 0 }
  0x46   : > { %1475 = vmatprep.mubr.bf16.mxu0 %v1608_v4  ;;  %1491 = vmatprep.mubr.bf16.mxu1 %v1609_v5  ;;  %v1607_v9 = vld [vmem:[#allocation6] sm:$0xff]   ;;  %v1611_v11 = vld [vmem:[%s1922_s6 + $0x48] sm:$0xff]   ;;  %v1613_v13 = vld [vmem:[%s1922_s6 + $0x50] sm:$0xff]   ;;  %s1768_s12 = smov [#allocation8]  }
  0x47   : > { %v1614_v14 = vld [vmem:[%s1922_s6 + $0x18] sm:$0xff]   ;;  %v1616_v16 = vld [vmem:[%s1922_s6 + $0x20] sm:$0xff]   ;;  %v1618_v18 = vld [vmem:[%s1922_s6 + $0x28] sm:$0xff]   ;;  %p1680_p8 = pnand %p1679_p1, %p2117_p4  ;;  %s1682_s22 = sshll.u32 %s1768_s12, 4  ;;  %s1683_s22 = int_to_ptr.vmem [resolvable:$false] %s1682_s22 }
  0x48   : > { %1462 = vmatpush3.bf16.msra.mxu0 %v1601_v1  ;;  %1516 = vmatpush3.bf16.msra.mxu1 %v1601_v1  ;;  %v1615_v15 = vld [vmem:[%s1922_s6 + $0x58] sm:$0xff]   ;;  %v1617_v17 = vld [vmem:[%s1922_s6 + $0x60] sm:$0xff]   ;;  %v1619_v19 = vld [vmem:[%s1922_s6 + $0x68] sm:$0xff]   ;;  %s1684_s1 = scalar_lea.vmem %s1683_s22, 4096  ;;  %p1685_p13 = scmp.lt.s32.totalorder %s2045_s10, %s1683_s22 }
  0x49   : > { %1463 = vmatprep.subr.bf16.mxu0 %v1602_v2  ;;  %1509 = vmatprep.subr.bf16.mxu1 %v1602_v2  ;;  %v1620_v20 = vld [vmem:[%s1922_s6 + $0x30] sm:$0xff]   ;;  %v1622_v22 = vld [vmem:[%s1922_s6 + $0x38] sm:$0xff]   ;;  %v1951_v24 = vld [vmem:[%s2098_s2] ss:$0 sm:$0xff]  ;;  %p1681_p12 = pneg %p1680_p8  ;;  %p1686_p0 = scmp.lt.s32.totalorder %s1684_s1, %s1678_s29 }
  0x4a   : > { %v1621_v21 = vld [vmem:[%s1922_s6 + $0x70] sm:$0xff]   ;;  %v1623_v23 = vld [vmem:[%s1922_s6 + $0x78] sm:$0xff]   ;;  %v1958_v29 = vld [vmem:[%s2099_s3] ss:$0 sm:$0xff] }
  0x4b   : > { %p1687_p2 = por %p1686_p0, %p1685_p13 }
  0x4c   : > { %1464 = vmatpush3.bf16.msra.mxu0 %v1602_v2  ;;  %1517 = vmatpush3.bf16.msra.mxu1 %v1602_v2 }
  0x4d   : > { %1465 = vmatprep.subr.bf16.mxu0 %v1603_v3  ;;  %1510 = vmatprep.subr.bf16.mxu1 %v1603_v3  ;;  %p1688_p3 = pnand %p1687_p2, %p1681_p12 }
  0x50   : > { %1466 = vmatpush3.bf16.msra.mxu0 %v1603_v3  ;;  %1518 = vmatpush3.bf16.msra.mxu1 %v1603_v3 }
  0x51   : > { %1467 = vmatprep.subr.bf16.mxu0 %v1604_v6  ;;  %1511 = vmatprep.subr.bf16.mxu1 %v1604_v6 }
  0x54   : > { %1468 = vmatpush3.bf16.msra.mxu0 %v1604_v6  ;;  %1519 = vmatpush3.bf16.msra.mxu1 %v1604_v6 }
  0x55   : > { %1469 = vmatprep.subr.bf16.mxu0 %v1605_v7  ;;  %1512 = vmatprep.subr.bf16.mxu1 %v1605_v7 }
  0x58   : > { %1470 = vmatpush3.bf16.msra.mxu0 %v1605_v7  ;;  %1520 = vmatpush3.bf16.msra.mxu1 %v1605_v7 }
  0x59   : > { %1471 = vmatprep.subr.bf16.mxu0 %v1606_v8  ;;  %1513 = vmatprep.subr.bf16.mxu1 %v1606_v8 }
  0x5c   : > { %1472 = vmatpush3.bf16.msra.mxu0 %v1606_v8  ;;  %1521 = vmatpush3.bf16.msra.mxu1 %v1606_v8 }
  0x5d   : > { %1473 = vmatprep.subr.bf16.mxu0 %v1607_v9  ;;  %1514 = vmatprep.subr.bf16.mxu1 %v1607_v9 }
  0x60   : > { %1474 = vmatpush3.bf16.msra.mxu0 %v1607_v9  ;;  %1522 = vmatpush3.bf16.msra.mxu1 %v1607_v9 }
  0x63   : > { %1476 = vmatmul.mubr.bf16.vlgmr.msra.gmra.mxu0 %v1610_v10  ;;  %1492 = vmatmul.mubr.bf16.vlgmr.msra.gmra.mxu1 %v1611_v11 }
  0x64   : > { %1479 = vmatprep.mubr.bf16.mxu0 %v1612_v12  ;;  %1495 = vmatprep.mubr.bf16.mxu1 %v1613_v13 }
  0x6b   : > { %1480 = vmatmul.mubr.bf16.gmra.mxu0 %v1614_v14  ;;  %1496 = vmatmul.mubr.bf16.gmra.mxu1 %v1615_v15 }
  0x6c   : > { %1483 = vmatprep.mubr.bf16.mxu0 %v1616_v16  ;;  %1499 = vmatprep.mubr.bf16.mxu1 %v1617_v17 }
  0x73   : > { %1484 = vmatmul.mubr.bf16.gmra.mxu0 %v1618_v18  ;;  %1500 = vmatmul.mubr.bf16.gmra.mxu1 %v1619_v19 }
  0x74   : > { %1487 = vmatprep.mubr.bf16.mxu0 %v1620_v20  ;;  %1503 = vmatprep.mubr.bf16.mxu1 %v1621_v21 }
  0x7b   : > { %1488 = vmatmul.mubr.bf16.gmra.mxu0 %v1622_v22  ;;  %1504 = vmatmul.mubr.bf16.gmra.mxu1 %v1623_v23 }
 0x123   : > { %v1477_v25 = vpop.f32.mrf.mxu0  ;;  %v1493_v26 = vpop.f32.mrf.mxu1 }
 0x124   : > { %v827_v27 = vmul.f32 %v1477_v25, %v1951_v24  ;;  %v843_v28 = vmul.f32 %v1493_v26, %v1951_v24 }
 0x125   : > { %v592_v30 = vpop.f32.mrf.mxu0  ;;  %v656_v31 = vpop.f32.mrf.mxu1 }
 0x126   : > { %v825_v32 = vmul.f32 %v1951_v24, %v592_v30  ;;  %v841_v33 = vmul.f32 %v1951_v24, %v656_v31  ;;  %v866_v36 = vadd.f32 %v1958_v29, %v827_v27  ;;  %v882_v37 = vadd.f32 %v1958_v29, %v843_v28 }
 0x127   : > { %v1478_v34 = vpop.f32.mrf.mxu0  ;;  %v1494_v35 = vpop.f32.mrf.mxu1 }
 0x128   : > { %v828_v38 = vmul.f32 %v1478_v34, %v1951_v24  ;;  %v844_v39 = vmul.f32 %v1494_v35, %v1951_v24  ;;  %v864_v42 = vadd.f32 %v1958_v29, %v825_v32  ;;  %v880_v43 = vadd.f32 %v1958_v29, %v841_v33 }
 0x129   : > { %v595_v40 = vpop.f32.mrf.mxu0  ;;  %v659_v41 = vpop.f32.mrf.mxu1  ;;  %v898_v50 = vmax.f32 %v866_v36, 0.0  ;;  %v914_v51 = vmax.f32 %v882_v37, 0.0 }
 0x12a   : > { %v826_v44 = vmul.f32 %v1951_v24, %v595_v40  ;;  %v842_v45 = vmul.f32 %v1951_v24, %v659_v41  ;;  %v867_v46 = vadd.f32 %v1958_v29, %v828_v38  ;;  %v883_v47 = vadd.f32 %v1958_v29, %v844_v39 }
 0x12b   : > { %v1481_v48 = vpop.f32.mrf.mxu0  ;;  %v1497_v49 = vpop.f32.mrf.mxu1  ;;  %v896_v60 = vmax.f32 %v864_v42, 0.0  ;;  %v912_v61 = vmax.f32 %v880_v43, 0.0 }
 0x12c   : > { %v865_v52 = vadd.f32 %v1958_v29, %v826_v44  ;;  %v881_v53 = vadd.f32 %v1958_v29, %v842_v45  ;;  %v899_v54 = vmax.f32 %v867_v46, 0.0  ;;  %v915_v55 = vmax.f32 %v883_v47, 0.0 }
 0x12d   : > { %v831_v56 = vmul.f32 %v1481_v48, %v1951_v24  ;;  %v847_v57 = vmul.f32 %v1497_v49, %v1951_v24  ;;  %v608_v58 = vpop.f32.mrf.mxu0  ;;  %v672_v59 = vpop.f32.mrf.mxu1 }
 0x12e   : > { %v897_v62 = vmax.f32 %v865_v52, 0.0  ;;  %v913_v63 = vmax.f32 %v881_v53, 0.0  ;;  %v1348_v0 = vpack.c.bf16 %v899_v54, %v898_v50  ;;  %v1388_v1 = vpack.c.bf16 %v915_v55, %v914_v51 }
 0x12f   : > { %v829_v2 = vmul.f32 %v1951_v24, %v608_v58  ;;  %v845_v3 = vmul.f32 %v1951_v24, %v672_v59  ;;  %v1482_v4 = vpop.f32.mrf.mxu0  ;;  %v1498_v5 = vpop.f32.mrf.mxu1  ;;  %v870_v8 = vadd.f32 %v1958_v29, %v831_v56  ;;  %v886_v9 = vadd.f32 %v1958_v29, %v847_v57 }
 0x130   : > { %v1343_v6 = vpack.c.bf16 %v897_v62, %v896_v60  ;;  %v1383_v7 = vpack.c.bf16 %v913_v63, %v912_v61  ;;  %1420 = vst [vmem:[%s1980_s8 + $0x8] sm:$0xff] %v1348_v0   ;;  %1428 = vst [vmem:[%s1980_s8 + $0x48] sm:$0xff] %v1388_v1   ;;  %v832_v10 = vmul.f32 %v1482_v4, %v1951_v24 }
 0x131   : > { %v848_v11 = vmul.f32 %v1498_v5, %v1951_v24  ;;  %v611_v12 = vpop.f32.mrf.mxu0  ;;  %v675_v13 = vpop.f32.mrf.mxu1  ;;  %v868_v14 = vadd.f32 %v1958_v29, %v829_v2  ;;  %v884_v15 = vadd.f32 %v1958_v29, %v845_v3  ;;  %v902_v27 = vmax.f32 %v870_v8, 0.0 }
 0x132   : > { %1344 = vst [vmem:[%s1980_s8] sm:$0xff] %v1343_v6   ;;  %1427 = vst [vmem:[%s1980_s8 + $0x40] sm:$0xff] %v1383_v7   ;;  %v830_v16 = vmul.f32 %v1951_v24, %v611_v12  ;;  %v846_v17 = vmul.f32 %v1951_v24, %v675_v13  ;;  %v871_v18 = vadd.f32 %v1958_v29, %v832_v10  ;;  %v918_v28 = vmax.f32 %v886_v9, 0.0 }
 0x133   : > { %v887_v19 = vadd.f32 %v1958_v29, %v848_v11  ;;  %v1485_v20 = vpop.f32.mrf.mxu0  ;;  %v1501_v21 = vpop.f32.mrf.mxu1  ;;  %v900_v34 = vmax.f32 %v868_v14, 0.0  ;;  %v916_v35 = vmax.f32 %v884_v15, 0.0 }
 0x134   : > { %v869_v22 = vadd.f32 %v1958_v29, %v830_v16  ;;  %v885_v23 = vadd.f32 %v1958_v29, %v846_v17  ;;  %v835_v25 = vmul.f32 %v1485_v20, %v1951_v24  ;;  %v851_v26 = vmul.f32 %v1501_v21, %v1951_v24 }
 0x135   : > { %v903_v30 = vmax.f32 %v871_v18, 0.0  ;;  %v919_v31 = vmax.f32 %v887_v19, 0.0  ;;  %v624_v32 = vpop.f32.mrf.mxu0  ;;  %v688_v33 = vpop.f32.mrf.mxu1 }
 0x136   : > { %v901_v36 = vmax.f32 %v869_v22, 0.0  ;;  %v917_v37 = vmax.f32 %v885_v23, 0.0  ;;  %v833_v40 = vmul.f32 %v1951_v24, %v624_v32  ;;  %v849_v41 = vmul.f32 %v1951_v24, %v688_v33 }
 0x137   : > { %v1358_v38 = vpack.c.bf16 %v903_v30, %v902_v27  ;;  %v1398_v39 = vpack.c.bf16 %v919_v31, %v918_v28  ;;  %v1486_v42 = vpop.f32.mrf.mxu0  ;;  %v1502_v43 = vpop.f32.mrf.mxu1  ;;  %v874_v46 = vadd.f32 %v1958_v29, %v835_v25  ;;  %v890_v47 = vadd.f32 %v1958_v29, %v851_v26 }
 0x138   : > { %v1353_v44 = vpack.c.bf16 %v901_v36, %v900_v34  ;;  %v1393_v45 = vpack.c.bf16 %v917_v37, %v916_v35  ;;  %v836_v48 = vmul.f32 %v1486_v42, %v1951_v24  ;;  %v852_v49 = vmul.f32 %v1502_v43, %v1951_v24 }
 0x139   : > { %1422 = vst [vmem:[%s1980_s8 + $0x18] sm:$0xff] %v1358_v38   ;;  %1430 = vst [vmem:[%s1980_s8 + $0x58] sm:$0xff] %v1398_v39   ;;  %v627_v50 = vpop.f32.mrf.mxu0  ;;  %v691_v51 = vpop.f32.mrf.mxu1  ;;  %v872_v52 = vadd.f32 %v1958_v29, %v833_v40  ;;  %v888_v53 = vadd.f32 %v1958_v29, %v849_v41  ;;  %v906_v60 = vmax.f32 %v874_v46, 0.0  ;;  %v922_v61 = vmax.f32 %v890_v47, 0.0 }
 0x13a   : > { %1421 = vst [vmem:[%s1980_s8 + $0x10] sm:$0xff] %v1353_v44   ;;  %1429 = vst [vmem:[%s1980_s8 + $0x50] sm:$0xff] %v1393_v45   ;;  %v834_v54 = vmul.f32 %v1951_v24, %v627_v50  ;;  %v850_v55 = vmul.f32 %v1951_v24, %v691_v51  ;;  %v875_v56 = vadd.f32 %v1958_v29, %v836_v48 }
 0x13b   : > { %v891_v57 = vadd.f32 %v1958_v29, %v852_v49  ;;  %v1489_v58 = vpop.f32.mrf.mxu0  ;;  %v1505_v59 = vpop.f32.mrf.mxu1  ;;  %v904_v6 = vmax.f32 %v872_v52, 0.0  ;;  %v920_v7 = vmax.f32 %v888_v53, 0.0 }
 0x13c   : > { %v873_v62 = vadd.f32 %v1958_v29, %v834_v54  ;;  %v889_v63 = vadd.f32 %v1958_v29, %v850_v55  ;;  %v907_v0 = vmax.f32 %v875_v56, 0.0  ;;  %v839_v2 = vmul.f32 %v1489_v58, %v1951_v24 }
 0x13d   : > { %v923_v1 = vmax.f32 %v891_v57, 0.0  ;;  %v855_v3 = vmul.f32 %v1505_v59, %v1951_v24  ;;  %v640_v4 = vpop.f32.mrf.mxu0  ;;  %v704_v5 = vpop.f32.mrf.mxu1 }
 0x13e   : > { %v905_v8 = vmax.f32 %v873_v62, 0.0  ;;  %v921_v9 = vmax.f32 %v889_v63, 0.0  ;;  %v1368_v10 = vpack.c.bf16 %v907_v0, %v906_v60  ;;  %v837_v12 = vmul.f32 %v1951_v24, %v640_v4 }
 0x13f   : > { %v1408_v11 = vpack.c.bf16 %v923_v1, %v922_v61  ;;  %v853_v13 = vmul.f32 %v1951_v24, %v704_v5  ;;  %v1490_v14 = vpop.f32.mrf.mxu0  ;;  %v1506_v15 = vpop.f32.mrf.mxu1  ;;  %v878_v18 = vadd.f32 %v1958_v29, %v839_v2  ;;  %v894_v19 = vadd.f32 %v1958_v29, %v855_v3 }
 0x140   : > { %v1363_v16 = vpack.c.bf16 %v905_v8, %v904_v6  ;;  %v1403_v17 = vpack.c.bf16 %v921_v9, %v920_v7  ;;  %1424 = vst [vmem:[%s1980_s8 + $0x28] sm:$0xff] %v1368_v10   ;;  %v840_v20 = vmul.f32 %v1490_v14, %v1951_v24  ;;  %v856_v21 = vmul.f32 %v1506_v15, %v1951_v24 }
 0x141   : > { %1432 = vst [vmem:[%s1980_s8 + $0x68] sm:$0xff] %v1408_v11   ;;  %v643_v22 = vpop.f32.mrf.mxu0  ;;  %v707_v23 = vpop.f32.mrf.mxu1  ;;  %v876_v25 = vadd.f32 %v1958_v29, %v837_v12  ;;  %v892_v26 = vadd.f32 %v1958_v29, %v853_v13  ;;  %v910_v34 = vmax.f32 %v878_v18, 0.0  ;;  %v926_v35 = vmax.f32 %v894_v19, 0.0 }
 0x142   : > { %1423 = vst [vmem:[%s1980_s8 + $0x20] sm:$0xff] %v1363_v16   ;;  %1431 = vst [vmem:[%s1980_s8 + $0x60] sm:$0xff] %v1403_v17   ;;  %v838_v27 = vmul.f32 %v1951_v24, %v643_v22  ;;  %v854_v28 = vmul.f32 %v1951_v24, %v707_v23  ;;  %v879_v30 = vadd.f32 %v1958_v29, %v840_v20 }
 0x143   : > { %v895_v31 = vadd.f32 %v1958_v29, %v856_v21  ;;  %v908_v24 = vmax.f32 %v876_v25, 0.0  ;;  %v924_v38 = vmax.f32 %v892_v26, 0.0 }
 0x144   : > { %v877_v32 = vadd.f32 %v1958_v29, %v838_v27  ;;  %v893_v33 = vadd.f32 %v1958_v29, %v854_v28  ;;  %v911_v36 = vmax.f32 %v879_v30, 0.0 }
 0x145   : > { %v927_v37 = vmax.f32 %v895_v31, 0.0 }
 0x146   : > { %v909_v39 = vmax.f32 %v877_v32, 0.0  ;;  %v925_v40 = vmax.f32 %v893_v33, 0.0  ;;  %v1378_v41 = vpack.c.bf16 %v911_v36, %v910_v34 }
 0x147   : > { %v1418_v42 = vpack.c.bf16 %v927_v37, %v926_v35 }
 0x148   : > { %v1373_v29 = vpack.c.bf16 %v909_v39, %v908_v24  ;;  %v1413_v43 = vpack.c.bf16 %v925_v40, %v924_v38  ;;  %1426 = vst [vmem:[%s1980_s8 + $0x38] sm:$0xff] %v1378_v41  }
 0x149   : > { %1434 = vst [vmem:[%s1980_s8 + $0x78] sm:$0xff] %v1418_v42  }
 0x14a   : > { %1425 = vst [vmem:[%s1980_s8 + $0x30] sm:$0xff] %v1373_v29   ;;  %1433 = vst [vmem:[%s1980_s8 + $0x70] sm:$0xff] %v1413_v43  }
 0x14b   : > { %1691 = shalt.err (!%p1688_p3)
}
 0x14c   : > { %s1692_s30 = scalar_lea.hbm %s2043_s18, 2048  ;;  %s1696_s25 = scalar_lea.hbm %s2100_s4, 14336 }
 0x14d   : > { %p1693_p5 = scmp.ne.s32.totalorder %s2043_s18, %s1692_s30  ;;  %p1697_p9 = scmp.lt.s32.totalorder %s2043_s18, %s2100_s4 }
 0x14e   : > { %p1698_p11 = scmp.lt.s32.totalorder %s1696_s25, %s1692_s30 }
 0x14f   : > { %p1694_p7 = pnand %p1693_p5, %p2117_p4 }
 0x150   : > { %p1699_p10 = por %p1698_p11, %p1697_p9 }
 0x151   : > { %p1695_p6 = pneg %p1694_p7 }
 0x153   : > { %p1700_p1 = pnand %p1699_p10, %p1695_p6 }
 0x155   : > { %1703 = shalt.err (!%p1700_p1)
}
 0x156   : > { %s1769_s8 = smov 64   ;;  %s1770_s9 = smov 4  }
 0x157   : > { %1529 = dma.vmem_to_hbm [thread:$0]  (%p2117_p4), %s2045_s10, 2048, %s2043_s18, %s1089_s11, %s1769_s8, %s1769_s8, %s1770_s9  }
 0x158 PF: > { %p1546_p8 = scmp.ge.s32.totalorder %s1762_s20, 2  ;;  %s1118_s24 = sand.u32 1, %s1742_s15  }
 0x159   : > { %p2118_p12 = scmp.ne.s32.totalorder %s2108_s26, 0  ;;  %s1119_s14 = scalar_lea.sflag [#allocation5], %s1118_s24 }
 0x15b   : > { %p1540_p13 = pnand %p1546_p8, %p2118_p12 }
 0x15d   : > { %p1541_p0 = pneg %p1540_p13 }
 0x15f   : > { %1737 = dma.done.wait (%p1541_p0), %s1119_s14, 2048  }
 0x160   : > { %1739 = vsyncadd (%p1541_p0), %s1119_s14, 4294965248  ;;  %s21_s20 = sadd.s32 1, %s1762_s20   ;;  %s2119_s15 = smov %s1746_s16 }
 0x161   : > { %p18_p2 = scmp.ge.s32.totalorder %s21_s20, 9   ;;  %s2120_s16 = smov %s1750_s17 }
 0x162   : > { %s2121_s17 = smov %s1894_s28  ;;  %s2122_s18 = smov %s1758_s19 }
 0x163   : > { %s2123_s19 = smov %s2125_s5  ;;  %20 = sbr.rel (!%p18_p2) target bundleno = 9 (0x9), region = 100 }
 0x168   :  { %1124 = vsyncpa [#allocation4], 1 }
 0x169   :  { %1126 = vsyncpa [#allocation4 + $0x1], 1 }
 0x16a   :  { %1127 = vsyncpa [#allocation7], 1 }
 0x16b   :  { %1128 = vsyncpa [#allocation5], 1 }
 0x16c   :  { %1130 = vsyncpa [#allocation5 + $0x1], 1 }

</bundles_post_ra>
